<compile_context>
chip_gen: v7x
topology: tpu7x:2x2x1
jax: 0.10.0
libtpu: 0.0.40
codegen_flags: <defaults>
</compile_context>

<pallas_src>
import functools

import jax
import jax.numpy as jnp
from jax.experimental import pallas as pl
from jax.experimental.pallas import tpu as pltpu

LANE = 128
MAX_TILE_B = 512  # batch rows per grid step (review: 512-1024; VMEM is tiny here)


def _round_up(n, m):
    return (n + m - 1) // m * m


def _choose_batch_tiling(B, max_tile=MAX_TILE_B):
    """Pad batch to a multiple of 256 and pick the largest 128-multiple tile
    that keeps the grid length >= 2 (so v7x can use both TensorCores)."""
    Bp = _round_up(max(B, 1), 2 * LANE)
    for cand in (max_tile, 384, 256, LANE):
        if cand <= max_tile and Bp % cand == 0 and Bp // cand >= 2:
            return Bp, cand
    return Bp, LANE


def mlp_kernel(x_ref, w1_ref, wmid_ref, bhid_ref, wout_ref, bout_ref, o_ref, *,
               n_mid, half):
    """x_ref: (tile_b, G_in) f32; w1_ref: (G_in, P) bf16; wmid_ref: (n_mid, P, P) bf16;
    bhid_ref: (n_mid+1, P) f32; wout_ref: (G_out_pad, P) bf16; bout_ref: (G_out_pad, 1) f32;
    o_ref: (G_out_pad, tile_b) f32 (output stored transposed, lane dim = batch)."""

    def hidden_layer(h_bf16, w_bf16, b_f32):
        y = jnp.dot(h_bf16, w_bf16, preferred_element_type=jnp.float32) + b_f32
        return jnp.maximum(y, 0.0)

    # Two independent M-chunks: chunk A's VPU epilogue (bias+ReLU+cast) overlaps
    # chunk B's MXU matmul at every layer (they share a basic block, so the
    # scheduler interleaves them).
    hs = [x_ref[pl.ds(c * half, half), :].astype(jnp.bfloat16) for c in range(2)]

    # fc1: (half, G_in) @ (G_in, P) -- x is consumed un-padded on the lane dim.
    w1 = w1_ref[...]
    b1 = bhid_ref[pl.ds(0, 1), :]
    hs = [hidden_layer(h, w1, b1) for h in hs]

    # fc2..fc4 (static unroll).
    for li in range(n_mid):
        w = wmid_ref[li]
        b = bhid_ref[pl.ds(li + 1, 1), :]
        hs = [hidden_layer(h.astype(jnp.bfloat16), w, b) for h in hs]

    # Final (out) layer on the re-joined tile, computed transposed so the
    # store is lane-dense along the batch axis (unmasked vst, 16x fewer bytes).
    h = jnp.concatenate(hs, axis=0).astype(jnp.bfloat16)          # (tile_b, P)
    o_t = jax.lax.dot_general(
        wout_ref[...], h,
        dimension_numbers=(((1,), (1,)), ((), ())),                # contract P with P
        preferred_element_type=jnp.float32)                        # (G_out_pad, tile_b)
    o_ref[...] = (o_t + bout_ref[...]).astype(o_ref.dtype)


def pack_generator_params(params, *, lane=LANE):
    """One-time packing (hoisted out of the forward per perf review).

    params: list of 5 (W [in, out], b [1, out]).  Hidden feature dims are
    zero-padded to P = round_up(max hidden width, 128); G_in is left un-padded
    (fc1's weight keeps K = G_in); the out layer is stored transposed with its
    output dim padded to a multiple of 8 sublanes.  Zero padding is exactly
    numerics-preserving through bias-add and ReLU.
    """
    hidden_widths = [w.shape[1] for w, _ in params[:-1]]
    P = _round_up(max(hidden_widths), lane)
    G_in = params[0][0].shape[0]
    G_out = params[-1][0].shape[1]
    g_out_pad = _round_up(G_out, 8)

    # fc1 weight: (G_in, P), K dimension un-padded.
    w1, _ = params[0]
    w1p = (jnp.zeros((G_in, P), jnp.float32)
           .at[:, :w1.shape[1]].set(w1).astype(jnp.bfloat16))

    # fc2..fc4 weights, zero-padded to (P, P) and stacked.
    w_mid = []
    for w, _ in params[1:-1]:
        fin, fout = w.shape
        w_mid.append(jnp.zeros((P, P), jnp.float32).at[:fin, :fout].set(w))
    w_mid = jnp.stack(w_mid, axis=0).astype(jnp.bfloat16)

    # fc1..fc4 biases (f32 epilogue keeps v5e-friendly numerics).
    b_hid = []
    for _, b in params[:-1]:
        fout = b.shape[-1]
        b_hid.append(jnp.zeros((1, P), jnp.float32).at[:, :fout].set(b.reshape(1, -1)))
    b_hid = jnp.concatenate(b_hid, axis=0)

    # out layer, transposed: rows = output features, cols = last hidden width.
    wo, bo = params[-1]
    fin, fout = wo.shape
    w_out_t = (jnp.zeros((g_out_pad, P), jnp.float32)
               .at[:fout, :fin].set(wo.T).astype(jnp.bfloat16))
    b_out_t = jnp.zeros((g_out_pad, 1), jnp.float32).at[:fout, 0].set(bo.reshape(-1))

    return (w1p, w_mid, b_hid, w_out_t, b_out_t)


@functools.partial(jax.jit, static_argnames=("g_out",))
def generator_forward(x, packed, *, g_out):
    """x: [B, G_in] float32.  packed: output of pack_generator_params."""
    w1p, w_mid, b_hid, w_out_t, b_out_t = packed
    B, G_in = x.shape
    P = w1p.shape[1]
    g_out_pad = w_out_t.shape[0]
    n_mid = w_mid.shape[0]
    n_hid = b_hid.shape[0]

    Bp, tile_b = _choose_batch_tiling(B)
    if Bp != B:
        x = jnp.pad(x, ((0, Bp - B), (0, 0)))   # pad batch rows only (no lane pad)

    kernel = functools.partial(mlp_kernel, n_mid=n_mid, half=tile_b // 2)

    out_t = pl.pallas_call(
        kernel,
        out_shape=jax.ShapeDtypeStruct((g_out_pad, Bp), jnp.float32),
        grid_spec=pltpu.PrefetchScalarGridSpec(
            num_scalar_prefetch=0,
            grid=(Bp // tile_b,),
            in_specs=[
                pl.BlockSpec((tile_b, G_in), lambda i: (i, 0)),     # x tile (un-padded lanes)
                pl.BlockSpec((G_in, P), lambda i: (0, 0)),          # fc1 weight (resident)
                pl.BlockSpec((n_mid, P, P), lambda i: (0, 0, 0)),   # fc2..fc4 weights (resident)
                pl.BlockSpec((n_hid, P), lambda i: (0, 0)),         # fc1..fc4 biases (resident)
                pl.BlockSpec((g_out_pad, P), lambda i: (0, 0)),     # out weight^T (resident)
                pl.BlockSpec((g_out_pad, 1), lambda i: (0, 0)),     # out bias (column)
            ],
            out_specs=pl.BlockSpec((g_out_pad, tile_b), lambda i: (0, i)),
        ),
        compiler_params=pltpu.CompilerParams(
            dimension_semantics=("parallel",)),  # batch steps shard across v7x TCs
    )(x, w1p, w_mid, b_hid, w_out_t, b_out_t)

    # Drop batch / feature padding and undo the transposed store.
    return out_t[:g_out, :B].T


def _xavier_uniform(key, fan_in, fan_out):
    # matches torch.nn.init.xavier_uniform_ (gain=1)
    limit = jnp.sqrt(6.0 / (fan_in + fan_out))
    return jax.random.uniform(key, (fan_in, fan_out), jnp.float32, -limit, limit)


def init_generator_params(key, G_in, G_out, w1, w2, w3, w4):
    dims = [G_in, w1, w2, w3, w4, G_out]
    params = []
    for i in range(5):
        key, kw, kb = jax.random.split(key, 3)
        W = _xavier_uniform(kw, dims[i], dims[i + 1])
        # TODO(synk): the reference calls xavier_uniform_ on 1-D biases, which
        # torch rejects; biases here are uniform(-0.1, 0.1) instead.
        b = jax.random.uniform(kb, (1, dims[i + 1]), jnp.float32, -0.1, 0.1)
        params.append((W, b))
    return params


def reference_forward(x, params):
    """Pure-JAX reference using the same bf16-operand / f32-accumulate scheme."""
    h = x
    for i, (w, b) in enumerate(params):
        h = jnp.dot(h.astype(jnp.bfloat16), w.astype(jnp.bfloat16),
                    preferred_element_type=jnp.float32) + b
        if i < len(params) - 1:
            h = jnp.maximum(h, 0.0)
    return h


if __name__ == "__main__":
    key = jax.random.PRNGKey(0)
    G_in, G_out = 16, 8
    w1, w2, w3, w4 = 32, 64, 32, 16
    batch = 256  # two batch tiles of 128 -> exercises the grid / megacore path

    kx, kp = jax.random.split(key)
    x = jax.random.normal(kx, (batch, G_in), jnp.float32)
    params = init_generator_params(kp, G_in, G_out, w1, w2, w3, w4)

    packed = pack_generator_params(params)  # one-time packing (hoisted out of forward)

    y = generator_forward(x, packed, g_out=G_out)
    y = jax.block_until_ready(y)

    y_ref = reference_forward(x, params)
    assert y.shape == (batch, G_out), y.shape
    assert jnp.allclose(y, y_ref, atol=2e-3, rtol=2e-3), "mismatch vs reference"

    print("KERNEL_OK")
</pallas_src>

<mosaic_0001>
module attributes {stable_mosaic.version = 11 : i64} {
  func.func @mlp_kernel(%arg0: i32, %arg1: memref<128x16xf32, #tpu.memory_space<vmem>>, %arg2: memref<16x128xbf16, #tpu.memory_space<vmem>>, %arg3: memref<3x128x128xbf16, #tpu.memory_space<vmem>>, %arg4: memref<4x128xf32, #tpu.memory_space<vmem>>, %arg5: memref<8x128xbf16, #tpu.memory_space<vmem>>, %arg6: memref<8x1xf32, #tpu.memory_space<vmem>>, %arg7: memref<8x128xf32, #tpu.memory_space<vmem>>) attributes {dimension_semantics = [#tpu.dimension_semantics<parallel>], iteration_bounds = array<i64: 2>, scalar_prefetch = 0 : i64, scratch_operands = 0 : i64, tpu.core_type = #tpu.core_type<tc>, window_params = [{transform_indices = @transform_0, window_bounds = array<i64: 128, 16>}, {pipeline_mode = #tpu.pipeline_mode<synchronous>, transform_indices = @transform_1, window_bounds = array<i64: 16, 128>}, {pipeline_mode = #tpu.pipeline_mode<synchronous>, transform_indices = @transform_2, window_bounds = array<i64: 3, 128, 128>}, {pipeline_mode = #tpu.pipeline_mode<synchronous>, transform_indices = @transform_3, window_bounds = array<i64: 4, 128>}, {pipeline_mode = #tpu.pipeline_mode<synchronous>, transform_indices = @transform_4, window_bounds = array<i64: 8, 128>}, {pipeline_mode = #tpu.pipeline_mode<synchronous>, transform_indices = @transform_5, window_bounds = array<i64: 8, 1>}, {transform_indices = @transform_6, window_bounds = array<i64: 8, 128>}]} {
    %c0 = arith.constant 0 : index
    %c0_0 = arith.constant 0 : index
    %0 = vector.load %arg1[%c0, %c0_0] : memref<128x16xf32, #tpu.memory_space<vmem>>, vector<64x16xf32>
    %1 = arith.truncf %0 : vector<64x16xf32> to vector<64x16xbf16>
    %c64 = arith.constant 64 : index
    %c0_1 = arith.constant 0 : index
    %2 = vector.load %arg1[%c64, %c0_1] : memref<128x16xf32, #tpu.memory_space<vmem>>, vector<64x16xf32>
    %3 = arith.truncf %2 : vector<64x16xf32> to vector<64x16xbf16>
    %c0_2 = arith.constant 0 : index
    %c0_3 = arith.constant 0 : index
    %4 = vector.load %arg2[%c0_2, %c0_3] : memref<16x128xbf16, #tpu.memory_space<vmem>>, vector<16x128xbf16>
    %c0_4 = arith.constant 0 : index
    %c0_5 = arith.constant 0 : index
    %5 = vector.load %arg4[%c0_4, %c0_5] : memref<4x128xf32, #tpu.memory_space<vmem>>, vector<1x128xf32>
    %cst = arith.constant dense<0.000000e+00> : vector<64x128xf32>
    %6 = tpu.matmul %1, %4, %cst {dimension_numbers = #tpu.dot_dimension_numbers<[1], [0], [0], [1], [0, 0, 1, 1], [], []>} : vector<64x16xbf16>, vector<16x128xbf16>, vector<64x128xf32> -> vector<64x128xf32>
    %7 = vector.broadcast %5 : vector<1x128xf32> to vector<64x128xf32>
    %8 = arith.addf %6, %7 : vector<64x128xf32>
    %cst_6 = arith.constant 0.000000e+00 : f32
    %9 = vector.broadcast %cst_6 : f32 to vector<64x128xf32>
    %10 = arith.maximumf %8, %9 : vector<64x128xf32>
    %cst_7 = arith.constant dense<0.000000e+00> : vector<64x128xf32>
    %11 = tpu.matmul %3, %4, %cst_7 {dimension_numbers = #tpu.dot_dimension_numbers<[1], [0], [0], [1], [0, 0, 1, 1], [], []>} : vector<64x16xbf16>, vector<16x128xbf16>, vector<64x128xf32> -> vector<64x128xf32>
    %12 = vector.broadcast %5 : vector<1x128xf32> to vector<64x128xf32>
    %13 = arith.addf %11, %12 : vector<64x128xf32>
    %cst_8 = arith.constant 0.000000e+00 : f32
    %14 = vector.broadcast %cst_8 : f32 to vector<64x128xf32>
    %15 = arith.maximumf %13, %14 : vector<64x128xf32>
    %c0_9 = arith.constant 0 : index
    %c0_10 = arith.constant 0 : index
    %c0_11 = arith.constant 0 : index
    %16 = vector.load %arg3[%c0_9, %c0_10, %c0_11] : memref<3x128x128xbf16, #tpu.memory_space<vmem>>, vector<1x128x128xbf16>
    %17 = vector.shape_cast %16 : vector<1x128x128xbf16> to vector<128x128xbf16>
    %c1 = arith.constant 1 : index
    %c0_12 = arith.constant 0 : index
    %18 = vector.load %arg4[%c1, %c0_12] : memref<4x128xf32, #tpu.memory_space<vmem>>, vector<1x128xf32>
    %19 = arith.truncf %10 : vector<64x128xf32> to vector<64x128xbf16>
    %cst_13 = arith.constant dense<0.000000e+00> : vector<64x128xf32>
    %20 = tpu.matmul %19, %17, %cst_13 {dimension_numbers = #tpu.dot_dimension_numbers<[1], [0], [0], [1], [0, 0, 1, 1], [], []>} : vector<64x128xbf16>, vector<128x128xbf16>, vector<64x128xf32> -> vector<64x128xf32>
    %21 = vector.broadcast %18 : vector<1x128xf32> to vector<64x128xf32>
    %22 = arith.addf %20, %21 : vector<64x128xf32>
    %cst_14 = arith.constant 0.000000e+00 : f32
    %23 = vector.broadcast %cst_14 : f32 to vector<64x128xf32>
    %24 = arith.maximumf %22, %23 : vector<64x128xf32>
    %25 = arith.truncf %15 : vector<64x128xf32> to vector<64x128xbf16>
    %cst_15 = arith.constant dense<0.000000e+00> : vector<64x128xf32>
    %26 = tpu.matmul %25, %17, %cst_15 {dimension_numbers = #tpu.dot_dimension_numbers<[1], [0], [0], [1], [0, 0, 1, 1], [], []>} : vector<64x128xbf16>, vector<128x128xbf16>, vector<64x128xf32> -> vector<64x128xf32>
    %27 = vector.broadcast %18 : vector<1x128xf32> to vector<64x128xf32>
    %28 = arith.addf %26, %27 : vector<64x128xf32>
    %cst_16 = arith.constant 0.000000e+00 : f32
    %29 = vector.broadcast %cst_16 : f32 to vector<64x128xf32>
    %30 = arith.maximumf %28, %29 : vector<64x128xf32>
    %c1_17 = arith.constant 1 : index
    %c0_18 = arith.constant 0 : index
    %c0_19 = arith.constant 0 : index
    %31 = vector.load %arg3[%c1_17, %c0_18, %c0_19] : memref<3x128x128xbf16, #tpu.memory_space<vmem>>, vector<1x128x128xbf16>
    %32 = vector.shape_cast %31 : vector<1x128x128xbf16> to vector<128x128xbf16>
    %c2 = arith.constant 2 : index
    %c0_20 = arith.constant 0 : index
    %33 = vector.load %arg4[%c2, %c0_20] : memref<4x128xf32, #tpu.memory_space<vmem>>, vector<1x128xf32>
    %34 = arith.truncf %24 : vector<64x128xf32> to vector<64x128xbf16>
    %cst_21 = arith.constant dense<0.000000e+00> : vector<64x128xf32>
    %35 = tpu.matmul %34, %32, %cst_21 {dimension_numbers = #tpu.dot_dimension_numbers<[1], [0], [0], [1], [0, 0, 1, 1], [], []>} : vector<64x128xbf16>, vector<128x128xbf16>, vector<64x128xf32> -> vector<64x128xf32>
    %36 = vector.broadcast %33 : vector<1x128xf32> to vector<64x128xf32>
    %37 = arith.addf %35, %36 : vector<64x128xf32>
    %cst_22 = arith.constant 0.000000e+00 : f32
    %38 = vector.broadcast %cst_22 : f32 to vector<64x128xf32>
    %39 = arith.maximumf %37, %38 : vector<64x128xf32>
    %40 = arith.truncf %30 : vector<64x128xf32> to vector<64x128xbf16>
    %cst_23 = arith.constant dense<0.000000e+00> : vector<64x128xf32>
    %41 = tpu.matmul %40, %32, %cst_23 {dimension_numbers = #tpu.dot_dimension_numbers<[1], [0], [0], [1], [0, 0, 1, 1], [], []>} : vector<64x128xbf16>, vector<128x128xbf16>, vector<64x128xf32> -> vector<64x128xf32>
    %42 = vector.broadcast %33 : vector<1x128xf32> to vector<64x128xf32>
    %43 = arith.addf %41, %42 : vector<64x128xf32>
    %cst_24 = arith.constant 0.000000e+00 : f32
    %44 = vector.broadcast %cst_24 : f32 to vector<64x128xf32>
    %45 = arith.maximumf %43, %44 : vector<64x128xf32>
    %c2_25 = arith.constant 2 : index
    %c0_26 = arith.constant 0 : index
    %c0_27 = arith.constant 0 : index
    %46 = vector.load %arg3[%c2_25, %c0_26, %c0_27] : memref<3x128x128xbf16, #tpu.memory_space<vmem>>, vector<1x128x128xbf16>
    %47 = vector.shape_cast %46 : vector<1x128x128xbf16> to vector<128x128xbf16>
    %c3 = arith.constant 3 : index
    %c0_28 = arith.constant 0 : index
    %48 = vector.load %arg4[%c3, %c0_28] : memref<4x128xf32, #tpu.memory_space<vmem>>, vector<1x128xf32>
    %49 = arith.truncf %39 : vector<64x128xf32> to vector<64x128xbf16>
    %cst_29 = arith.constant dense<0.000000e+00> : vector<64x128xf32>
    %50 = tpu.matmul %49, %47, %cst_29 {dimension_numbers = #tpu.dot_dimension_numbers<[1], [0], [0], [1], [0, 0, 1, 1], [], []>} : vector<64x128xbf16>, vector<128x128xbf16>, vector<64x128xf32> -> vector<64x128xf32>
    %51 = vector.broadcast %48 : vector<1x128xf32> to vector<64x128xf32>
    %52 = arith.addf %50, %51 : vector<64x128xf32>
    %cst_30 = arith.constant 0.000000e+00 : f32
    %53 = vector.broadcast %cst_30 : f32 to vector<64x128xf32>
    %54 = arith.maximumf %52, %53 : vector<64x128xf32>
    %55 = arith.truncf %45 : vector<64x128xf32> to vector<64x128xbf16>
    %cst_31 = arith.constant dense<0.000000e+00> : vector<64x128xf32>
    %56 = tpu.matmul %55, %47, %cst_31 {dimension_numbers = #tpu.dot_dimension_numbers<[1], [0], [0], [1], [0, 0, 1, 1], [], []>} : vector<64x128xbf16>, vector<128x128xbf16>, vector<64x128xf32> -> vector<64x128xf32>
    %57 = vector.broadcast %48 : vector<1x128xf32> to vector<64x128xf32>
    %58 = arith.addf %56, %57 : vector<64x128xf32>
    %cst_32 = arith.constant 0.000000e+00 : f32
    %59 = vector.broadcast %cst_32 : f32 to vector<64x128xf32>
    %60 = arith.maximumf %58, %59 : vector<64x128xf32>
    %61 = tpu.concatenate %54, %60 in 0 : vector<64x128xf32>, vector<64x128xf32> -> vector<128x128xf32>
    %62 = arith.truncf %61 : vector<128x128xf32> to vector<128x128xbf16>
    %c0_33 = arith.constant 0 : index
    %c0_34 = arith.constant 0 : index
    %63 = vector.load %arg5[%c0_33, %c0_34] : memref<8x128xbf16, #tpu.memory_space<vmem>>, vector<8x128xbf16>
    %cst_35 = arith.constant dense<0.000000e+00> : vector<8x128xf32>
    %64 = tpu.matmul %63, %62, %cst_35 {dimension_numbers = #tpu.dot_dimension_numbers<[1], [1], [0], [0], [0, 0, 1, 0], [], []>} : vector<8x128xbf16>, vector<128x128xbf16>, vector<8x128xf32> -> vector<8x128xf32>
    %c0_36 = arith.constant 0 : index
    %c0_37 = arith.constant 0 : index
    %65 = vector.load %arg6[%c0_36, %c0_37] : memref<8x1xf32, #tpu.memory_space<vmem>>, vector<8x1xf32>
    %66 = vector.broadcast %65 : vector<8x1xf32> to vector<8x128xf32>
    %67 = arith.addf %64, %66 : vector<8x128xf32>
    %c0_38 = arith.constant 0 : index
    %c0_39 = arith.constant 0 : index
    %68 = vector.load %arg7[%c0_38, %c0_39] : memref<8x128xf32, #tpu.memory_space<vmem>>, vector<8x128xf32>
    tpu.vector_store %arg7[%c0_38, %c0_39], %67 {strides = array<i32>} : memref<8x128xf32, #tpu.memory_space<vmem>>, vector<8x128xf32>,
    return
  }
  func.func @transform_0(%arg0: i32) -> (i32, i32) {
    %c0_i32 = arith.constant 0 : i32
    %c0_i32_0 = arith.constant 0 : i32
    return %arg0, %c0_i32 : i32, i32
  }
  func.func @transform_1(%arg0: i32) -> (i32, i32) {
    %c0_i32 = arith.constant 0 : i32
    %c0_i32_0 = arith.constant 0 : i32
    %c0_i32_1 = arith.constant 0 : i32
    return %c0_i32, %c0_i32_0 : i32, i32
  }
  func.func @transform_2(%arg0: i32) -> (i32, i32, i32) {
    %c0_i32 = arith.constant 0 : i32
    %c0_i32_0 = arith.constant 0 : i32
    %c0_i32_1 = arith.constant 0 : i32
    %c0_i32_2 = arith.constant 0 : i32
    return %c0_i32, %c0_i32_0, %c0_i32_1 : i32, i32, i32
  }
  func.func @transform_3(%arg0: i32) -> (i32, i32) {
    %c0_i32 = arith.constant 0 : i32
    %c0_i32_0 = arith.constant 0 : i32
    %c0_i32_1 = arith.constant 0 : i32
    return %c0_i32, %c0_i32_0 : i32, i32
  }
  func.func @transform_4(%arg0: i32) -> (i32, i32) {
    %c0_i32 = arith.constant 0 : i32
    %c0_i32_0 = arith.constant 0 : i32
    %c0_i32_1 = arith.constant 0 : i32
    return %c0_i32, %c0_i32_0 : i32, i32
  }
  func.func @transform_5(%arg0: i32) -> (i32, i32) {
    %c0_i32 = arith.constant 0 : i32
    %c0_i32_0 = arith.constant 0 : i32
    %c0_i32_1 = arith.constant 0 : i32
    return %c0_i32, %c0_i32_0 : i32, i32
  }
  func.func @transform_6(%arg0: i32) -> (i32, i32) {
    %c0_i32 = arith.constant 0 : i32
    %c0_i32_0 = arith.constant 0 : i32
    return %c0_i32, %arg0 : i32, i32
  }
}

</mosaic_0001>

<bundles_post_ra>
// kernel: generator_forward.1
= control target key start
LH: loop header
LB: loop body
LE: loop exit
PB: predicated region body
PF: predicated region fallthrough
CT: control target
= control target key end

     0   :  { %11 = vsyncpa [#allocation3], 0  ;;  %s2110_s0 = inlined_call_operand.vmem [shape: f32[256,16], index: 0, kind: input, shape index: {}]   ;;  %s2111_s1 = inlined_call_operand.vmem [shape: bf16[16,128], index: 1, kind: input, shape index: {}]   ;;  %s2112_s2 = inlined_call_operand.vmem [shape: bf16[3,128,128], index: 2, kind: input, shape index: {}]   ;;  %s2113_s3 = inlined_call_operand.vmem [shape: f32[4,128], index: 3, kind: input, shape index: {}]   ;;  %s2114_s4 = inlined_call_operand.vmem [shape: bf16[8,128], index: 4, kind: input, shape index: {}]   ;;  %s2115_s5 = inlined_call_operand.vmem [shape: f32[8,1], index: 5, kind: input, shape index: {}]   ;;  %s2116_s6 = inlined_call_operand.hbm [shape: f32[8,256], index: 6, kind: output, shape index: {}]  }
   0x1   :  { %13 = vsyncpa [#allocation3 + $0x1], 0  ;;  %s1787_s21 = smov 0   ;;  %s1789_s22 = smov 0  }
   0x2   :  { %s1791_s23 = smov 0   ;;  %s1793_s24 = smov 0  }
   0x3 LB: > { %s1808_s25 = sadd.s32 4294967295, %s1746_s24   ;;  %s1261_s26 = sadd.s32 4294967294, %s1746_s24   ;;  %s1746_s24 = sphi %s1793_s24, %s2122_s24   ;;  %s1742_s23 = sphi %s1791_s23, %s2121_s23   ;;  %s1738_s22 = sphi %s1789_s22, %s2120_s22   ;;  %s1734_s21 = sphi %s1787_s21, %s2119_s21  }
   0x4   : > { %s1812_s27 = sadd.s32 1, %s1746_s24   ;;  %s157_s28 = sadd.s32 1, %s1742_s23 }
   0x5   : > { %s154_s29 = ssub.s32 %s1746_s24, %s1812_s27  ;;  %p167_p0 = scmp.ne.s32.totalorder %s1742_s23, %s1738_s22 }
   0x6   : > { %p155_p1 = scmp.eq.s32.totalorder %s154_s29, 0  ;;  %p168_p2 = scmp.eq.s32.totalorder %s1808_s25, 1 }
   0x7   : > { %p173_p3 = scmp.ne.s32.totalorder %s1738_s22, %s1734_s21  ;;  %p174_p4 = scmp.eq.s32.totalorder %s1261_s26, 1 }
   0x8   : > { %s1823_s30 = scalar_select %p155_p1, %s1742_s23, %s157_s28  }
   0x9   : > { %p1825_p5 = por %p168_p2, %p167_p0  ;;  %p1829_p6 = por %p174_p4, %p173_p3 }
   0xa   : > { %p1264_p7 = scmp.ge.s32.totalorder %s1746_s24, 1  ;;  %p216_p8 = scmp.lt.s32.totalorder %s1746_s24, 3 }
   0xc   : > { %p217_p9 = pnand %p1264_p7, %p216_p8 }
   0xd   : > { %v1659_v0 = vld [vmem:[%s2111_s1] sm:$0xff] (!%p217_p9)   ;;  %s1266_s11 = sshll.u32 (!%p217_p9), %s1808_s25, 4  ;;  %vm290_vm0 = vcmask (!%p217_p9), 130048   ;;  %v1853_v19 = vld [vmem:[%s2112_s2 + $0x8] sm:$0xff] (!%p217_p9)   ;;  %v1861_v25 = vld [vmem:[%s2112_s2 + $0x10] sm:$0xff] (!%p217_p9)   ;;  %vm1749_vm1 = vmmov (!%p217_p9), 0  }
   0xe   : > { %220 = sbr.rel (%p217_p9) target bundleno = 1206 (0x4b6), region = 44  ;;  %p247_p10 = scmp.lt.s32.totalorder (!%p217_p9), %s1266_s11, 31  ;;  %1432 = vmatprep.subr.bf16.mxu0 (!%p217_p9), %v1659_v0  ;;  %1442 = vmatprep.subr.bf16.mxu1 (!%p217_p9), %v1659_v0  ;;  %v1842_v1 = vld [vmem:[%s2112_s2] sm:$0xff] (!%p217_p9)   ;;  %v1869_v28 = vld [vmem:[%s2112_s2 + $0x18] sm:$0xff] (!%p217_p9)   ;;  %v1887_v30 = vld [vmem:[%s2112_s2 + $0x28] sm:$0xff] (!%p217_p9)  }
   0xf   : > { %1433 = vmatpush3.bf16.msra.mxu0 (!%p217_p9), %v1659_v0  ;;  %1443 = vmatpush3.bf16.msra.mxu1 (!%p217_p9), %v1659_v0  ;;  %v1880_v29 = vld [vmem:[%s2112_s2 + $0x20] sm:$0xff] (!%p217_p9)   ;;  %v1895_v31 = vld [vmem:[%s2112_s2 + $0x30] sm:$0xff] (!%p217_p9)   ;;  %v1902_v32 = vld [vmem:[%s2112_s2 + $0x38] sm:$0xff] (!%p217_p9)   ;;  %s243_s16 = sand.u32 (!%p217_p9), 1, %s1738_s22   ;;  %s1338_s18 = sshll.u32 (!%p217_p9), %s1808_s25, 7 }
  0x10   : > { %1452 = vmatprep.subr.bf16.mxu1 (!%p217_p9), %v1842_v1  ;;  %v1910_v33 = vld [vmem:[%s2112_s2 + $0x40] sm:$0xff] (!%p217_p9)   ;;  %v1915_v34 = vld [vmem:[%s2112_s2 + $0x48] sm:$0xff] (!%p217_p9)   ;;  %v1923_v35 = vld [vmem:[%s2112_s2 + $0x50] sm:$0xff] (!%p217_p9)   ;;  %s2068_s29 = scalar_lea.hbm (!%p217_p9), %s2116_s6, %s1338_s18  ;;  %s1189_s9 = scalar_lea.sflag (!%p217_p9), [#allocation3], %s243_s16 }
  0x11   : > { %1500 = vmatprep.subr.bf16.mxu0 (!%p217_p9), %v1910_v33  ;;  %v1930_v36 = vld [vmem:[%s2112_s2 + $0x58] sm:$0xff] (!%p217_p9)   ;;  %v1937_v37 = vld [vmem:[%s2112_s2 + $0x60] sm:$0xff] (!%p217_p9)   ;;  %v1944_v38 = vld [vmem:[%s2112_s2 + $0x68] sm:$0xff] (!%p217_p9)   ;;  %s1751_s10 = smov (!%p217_p9), [#allocation2]  }
  0x12   : > { %v1268_v39 = vld [vmem:[%s2113_s3] ss:$0 sm:$0xff] (!%p217_p9) }
  0x15   : > { %s2124_s11 = smov (!%p247_p10, %s1266_s11), 31 }
  0x16   : > { %s1267_s14 = sshll.u32 %s2124_s11, 3  ;;  %s1688_s11 = sshll.u32 %s1751_s10, 4  ;;  %s1689_s11 = int_to_ptr.vmem [resolvable:$false] %s1688_s11 }
  0x17   : > { %s250_s17 = scalar_lea.vmem %s2110_s0, %s1267_s14  ;;  %s1690_s12 = scalar_lea.vmem %s1689_s11, 256 }
  0x18   : > { %v253_v2 = vld [vmem:[%s250_s17] sm:$0xff]  ;;  %v254_v3 = vld [vmem:[%s250_s17 + $0x8] sm:$0xff]  ;;  %v255_v4 = vld [vmem:[%s250_s17 + $0x10] sm:$0xff] }
  0x19   : > { %v261_v5 = vpack.c.bf16 %v254_v3, %v253_v2  ;;  %v256_v6 = vld [vmem:[%s250_s17 + $0x18] sm:$0xff]  ;;  %v257_v7 = vld [vmem:[%s250_s17 + $0x20] sm:$0xff]  ;;  %v258_v8 = vld [vmem:[%s250_s17 + $0x28] sm:$0xff] }
  0x1a   : > { %v262_v9 = vpack.c.bf16 %v256_v6, %v255_v4  ;;  %v263_v10 = vpack.c.bf16 %v258_v8, %v257_v7  ;;  %v265_v11 = vld [vmem:[%s250_s17 + $0x40] sm:$0xff]  ;;  %v266_v12 = vld [vmem:[%s250_s17 + $0x48] sm:$0xff]  ;;  %v267_v13 = vld [vmem:[%s250_s17 + $0x50] sm:$0xff] }
  0x1b   : > { %1434 = vmatprep.mubr.msk.bf16.mxu0 %vm290_vm0, %v261_v5  ;;  %v268_v14 = vld [vmem:[%s250_s17 + $0x58] sm:$0xff]  ;;  %v273_v15 = vpack.c.bf16 %v266_v12, %v265_v11  ;;  %v269_v17 = vld [vmem:[%s250_s17 + $0x60] sm:$0xff]  ;;  %v270_v18 = vld [vmem:[%s250_s17 + $0x68] sm:$0xff] }
  0x1c   : > { %1435 = vmatmul.mubr.msk.bf16.vlgmr.msra.gmra.mrb[0].mxu0 %vm290_vm0, %v262_v9  ;;  %v274_v16 = vpack.c.bf16 %v268_v14, %v267_v13  ;;  %v259_v20 = vld [vmem:[%s250_s17 + $0x30] sm:$0xff]  ;;  %v260_v21 = vld [vmem:[%s250_s17 + $0x38] sm:$0xff]  ;;  %v275_v22 = vpack.c.bf16 %v270_v18, %v269_v17 }
  0x1d   : > { %1438 = vmatprep.mubr.msk.bf16.mxu0 %vm290_vm0, %v263_v10  ;;  %1444 = vmatprep.mubr.msk.bf16.mxu1 %vm290_vm0, %v273_v15  ;;  %v271_v23 = vld [vmem:[%s250_s17 + $0x70] sm:$0xff]  ;;  %v272_v24 = vld [vmem:[%s250_s17 + $0x78] sm:$0xff]  ;;  %v264_v26 = vpack.c.bf16 %v260_v21, %v259_v20  ;;  %s1265_s17 = sshll.u32 %s243_s16, 3 }
  0x1e   : > { %1445 = vmatmul.mubr.msk.bf16.vlgmr.msra.gmra.mrb[0].mxu1 %vm290_vm0, %v274_v16  ;;  %v276_v27 = vpack.c.bf16 %v272_v24, %v271_v23  ;;  %1501 = vmatpush3.bf16.msra.mxu0 %v1910_v33  ;;  %s245_s19 = scalar_lea.vmem [#allocation2], %s1265_s17 }
  0x1f   : > { %1448 = vmatprep.mubr.msk.bf16.mxu1 %vm290_vm0, %v275_v22  ;;  %1453 = vmatpush3.bf16.msra.mxu1 %v1842_v1  ;;  %s1202_s20 = sshll.u32 %s245_s19, 4  ;;  %s2070_s20 = int_to_ptr.vmem [resolvable:$true] %s1202_s20 }
  0x20   : > { %1454 = vmatprep.subr.bf16.mxu1 %v1853_v19  ;;  %1502 = vmatprep.subr.bf16.mxu0 %v1915_v34  ;;  %s1684_s25 = scalar_lea.vmem %s2070_s20, 128  ;;  %p1691_p0 = scmp.lt.s32.totalorder %s2070_s20, %s1689_s11 }
  0x21   : > { %p1685_p11 = scmp.ne.s32.totalorder %s2070_s20, %s1684_s25  ;;  %p1692_p1 = scmp.lt.s32.totalorder %s1690_s12, %s1684_s25 }
  0x22   : > { %1503 = vmatpush3.bf16.msra.mxu0 %v1915_v34 }
  0x23   : > { %1455 = vmatpush3.bf16.msra.mxu1 %v1853_v19  ;;  %1504 = vmatprep.subr.bf16.mxu0 %v1923_v35  ;;  %p1686_p12 = pnand %p1685_p11, %p1825_p5  ;;  %p1693_p2 = por %p1692_p1, %p1691_p0 }
  0x24   : > { %1439 = vmatmul.mubr.msk.bf16.gmra.mrb[4].mxu0 %vm290_vm0, %v264_v26  ;;  %1456 = vmatprep.subr.bf16.mxu1 %v1861_v25 }
  0x25   : > { %p1687_p13 = pneg %p1686_p12 }
  0x26   : > { %1449 = vmatmul.mubr.msk.bf16.gmra.mrb[4].mxu1 %vm290_vm0, %v276_v27  ;;  %1505 = vmatpush3.bf16.msra.mxu0 %v1923_v35 }
  0x27   : > { %1457 = vmatpush3.bf16.msra.mxu1 %v1861_v25  ;;  %1506 = vmatprep.subr.bf16.mxu0 %v1930_v36  ;;  %p1694_p3 = pnand %p1693_p2, %p1687_p13 }
  0x28   : > { %1458 = vmatprep.subr.bf16.mxu1 %v1869_v28 }
  0x2a   : > { %1507 = vmatpush3.bf16.msra.mxu0 %v1930_v36 }
  0x2b   : > { %1459 = vmatpush3.bf16.msra.mxu1 %v1869_v28  ;;  %1508 = vmatprep.subr.bf16.mxu0 %v1937_v37 }
  0x2c   : > { %1460 = vmatprep.subr.bf16.mxu1 %v1880_v29 }
  0x2e   : > { %1509 = vmatpush3.bf16.msra.mxu0 %v1937_v37 }
  0x2f   : > { %1461 = vmatpush3.bf16.msra.mxu1 %v1880_v29  ;;  %1510 = vmatprep.subr.bf16.mxu0 %v1944_v38 }
  0x30   : > { %1462 = vmatprep.subr.bf16.mxu1 %v1887_v30 }
  0x32   : > { %1511 = vmatpush3.bf16.msra.mxu0 %v1944_v38 }
  0x33   : > { %1463 = vmatpush3.bf16.msra.mxu1 %v1887_v30 }
  0x34   : > { %1464 = vmatprep.subr.bf16.mxu1 %v1895_v31 }
  0x37   : > { %1465 = vmatpush3.bf16.msra.mxu1 %v1895_v31 }
  0x38   : > { %1466 = vmatprep.subr.bf16.mxu1 %v1902_v32 }
  0x3b   : > { %1467 = vmatpush3.bf16.msra.mxu1 %v1902_v32 }
  0x3c   : > { %1476 = vmatprep.subr.bf16.mxu1 %v1842_v1 }
  0xef   : > { %v1436_v40 = vpop.f32.mrb[0].mxu0 }
  0xf0   : > { %v346_v41 = vadd.f32 %v1436_v40, %v1268_v39  ;;  %v337_v42 = vpop.f32.mrb[1].mxu0 }
  0xf1   : > { %v338_v43 = vadd.f32 %v1268_v39, %v337_v42  ;;  %v1437_v44 = vpop.f32.mrb[2].mxu0  ;;  %v1446_v47 = vpop.f32.mrb[0].mxu1 }
  0xf2   : > { %v349_v45 = vadd.f32 %v1437_v44, %v1268_v39  ;;  %v340_v46 = vpop.f32.mrb[3].mxu0  ;;  %v431_v49 = vadd.f32 %v1446_v47, %v1268_v39  ;;  %v422_v50 = vpop.f32.mrb[1].mxu1  ;;  %v370_v51 = vmax.f32 %v346_v41, 0.0 }
  0xf3   : > { %v341_v48 = vadd.f32 %v1268_v39, %v340_v46  ;;  %v423_v53 = vadd.f32 %v1268_v39, %v422_v50  ;;  %v1447_v54 = vpop.f32.mrb[2].mxu1  ;;  %v368_v55 = vmax.f32 %v338_v43, 0.0 }
  0xf4   : > { %v371_v52 = vmax.f32 %v349_v45, 0.0  ;;  %v455_v57 = vmax.f32 %v431_v49, 0.0  ;;  %v434_v58 = vadd.f32 %v1447_v54, %v1268_v39  ;;  %v425_v59 = vpop.f32.mrb[3].mxu1 }
  0xf5   : > { %v369_v56 = vmax.f32 %v341_v48, 0.0  ;;  %v453_v61 = vmax.f32 %v423_v53, 0.0  ;;  %v426_v62 = vadd.f32 %v1268_v39, %v425_v59  ;;  %v2005_v53 = vld [vmem:[%s2112_s2 + $0x88] sm:$0xff]  }
  0xf6   : > { %v479_v60 = vpack.c.bf16 %v371_v52, %v370_v51  ;;  %v456_v2 = vmax.f32 %v434_v58, 0.0 }
  0xf7   : > { %v478_v63 = vpack.c.bf16 %v369_v56, %v368_v55  ;;  %v1440_v0 = vpop.f32.mrb[4].mxu0  ;;  %v454_v5 = vmax.f32 %v426_v62, 0.0  ;;  %v1678_v62 = vld [vmem:[%s2112_s2 + $0x90] sm:$0xff]  }
  0xf8   : > { %v362_v3 = vadd.f32 %v1440_v0, %v1268_v39  ;;  %v353_v4 = vpop.f32.mrb[5].mxu0  ;;  %v608_v8 = vpack.c.bf16 %v456_v2, %v455_v57 }
  0xf9   : > { %v354_v6 = vadd.f32 %v1268_v39, %v353_v4  ;;  %v1441_v7 = vpop.f32.mrb[6].mxu0  ;;  %1468 = vmatprep.mubr.bf16.mxu1 %v478_v63  ;;  %v607_v12 = vpack.c.bf16 %v454_v5, %v453_v61  ;;  %v1450_v13 = vpop.f32.mrb[4].mxu1  ;;  %v1680_v4 = vld [vmem:[%s2112_s2 + $0xa0] sm:$0xff]   ;;  %v1681_v5 = vld [vmem:[%s2112_s2 + $0xa8] sm:$0xff]  }
  0xfa   : > { %v374_v9 = vmax.f32 %v362_v3, 0.0  ;;  %v365_v10 = vadd.f32 %v1441_v7, %v1268_v39  ;;  %v356_v11 = vpop.f32.mrb[7].mxu0  ;;  %1469 = vmatmul.mubr.bf16.vlgmr.msra.gmra.mrb[8].mxu1 %v479_v60  ;;  %v447_v16 = vadd.f32 %v1450_v13, %v1268_v39  ;;  %v438_v17 = vpop.f32.mrb[5].mxu1  ;;  %v1679_v3 = vld [vmem:[%s2112_s2 + $0x98] sm:$0xff]  }
  0xfb   : > { %v372_v14 = vmax.f32 %v354_v6, 0.0  ;;  %v357_v15 = vadd.f32 %v1268_v39, %v356_v11  ;;  %1477 = vmatpush3.bf16.msra.mxu1 %v1842_v1  ;;  %v439_v20 = vadd.f32 %v1268_v39, %v438_v17  ;;  %v1451_v21 = vpop.f32.mrb[6].mxu1 }
  0xfc   : > { %v375_v18 = vmax.f32 %v365_v10, 0.0  ;;  %1478 = vmatprep.subr.bf16.mxu1 %v1853_v19  ;;  %v459_v23 = vmax.f32 %v447_v16, 0.0  ;;  %v450_v24 = vadd.f32 %v1451_v21, %v1268_v39  ;;  %v441_v26 = vpop.f32.mrb[7].mxu1 }
  0xfd   : > { %v373_v22 = vmax.f32 %v357_v15, 0.0  ;;  %v457_v40 = vmax.f32 %v439_v20, 0.0  ;;  %v442_v41 = vadd.f32 %v1268_v39, %v441_v26 }
  0xfe   : > { %v481_v27 = vpack.c.bf16 %v375_v18, %v374_v9  ;;  %v460_v43 = vmax.f32 %v450_v24, 0.0 }
  0xff   : > { %v480_v42 = vpack.c.bf16 %v373_v22, %v372_v14  ;;  %1479 = vmatpush3.bf16.msra.mxu1 %v1853_v19  ;;  %v458_v1 = vmax.f32 %v442_v41, 0.0  ;;  %v1674_v19 = vld [vmem:[%s2112_s2 + $0x70] sm:$0xff]  }
 0x100   : > { %1480 = vmatprep.subr.bf16.mxu1 %v1861_v25  ;;  %v610_v44 = vpack.c.bf16 %v460_v43, %v459_v23  ;;  %1512 = vmatprep.subr.bf16.mxu0 %v1674_v19 }
 0x101   : > { %1472 = vmatprep.mubr.bf16.mxu1 %v480_v42  ;;  %v609_v45 = vpack.c.bf16 %v458_v1, %v457_v40  ;;  %1513 = vmatpush3.bf16.msra.mxu0 %v1674_v19 }
 0x102   : > { %1473 = vmatmul.mubr.bf16.gmra.mrb[12].mxu1 %v481_v27 }
 0x103   : > { %1481 = vmatpush3.bf16.msra.mxu1 %v1861_v25  ;;  %1492 = vmatprep.mubr.bf16.mxu1 %v607_v12  ;;  %v1675_v25 = vld [vmem:[%s2112_s2 + $0x78] sm:$0xff]  }
 0x104   : > { %1482 = vmatprep.subr.bf16.mxu1 %v1869_v28  ;;  %1514 = vmatprep.subr.bf16.mxu0 %v1675_v25 }
 0x105   : > { %1515 = vmatpush3.bf16.msra.mxu0 %v1675_v25 }
 0x107   : > { %1483 = vmatpush3.bf16.msra.mxu1 %v1869_v28  ;;  %v1988_v28 = vld [vmem:[%s2112_s2 + $0x80] sm:$0xff]  }
 0x108   : > { %1484 = vmatprep.subr.bf16.mxu1 %v1880_v29  ;;  %1548 = vmatprep.subr.bf16.mxu0 %v1988_v28 }
 0x10b   : > { %1485 = vmatpush3.bf16.msra.mxu1 %v1880_v29  ;;  %v1995_v29 = vld [vmem:[%s2113_s3 + $0x1] ss:$0 sm:$0xff] }
 0x10c   : > { %1486 = vmatprep.subr.bf16.mxu1 %v1887_v30 }
 0x10f   : > { %1487 = vmatpush3.bf16.msra.mxu1 %v1887_v30 }
 0x110   : > { %1488 = vmatprep.subr.bf16.mxu1 %v1895_v31 }
 0x113   : > { %1489 = vmatpush3.bf16.msra.mxu1 %v1895_v31 }
 0x114   : > { %1490 = vmatprep.subr.bf16.mxu1 %v1902_v32 }
 0x117   : > { %1491 = vmatpush3.bf16.msra.mxu1 %v1902_v32 }
 0x118   : > { %1524 = vmatprep.subr.bf16.mxu1 %v1910_v33 }
 0x11a   : > { %1493 = vmatmul.mubr.bf16.vlgmr.msra.gmra.mrb[16].mxu1 %v608_v8 }
 0x11b   : > { %1496 = vmatprep.mubr.bf16.mxu1 %v609_v45  ;;  %1525 = vmatpush3.bf16.msra.mxu1 %v1910_v33 }
 0x11c   : > { %1526 = vmatprep.subr.bf16.mxu1 %v1915_v34 }
 0x11f   : > { %1527 = vmatpush3.bf16.msra.mxu1 %v1915_v34 }
 0x120   : > { %1528 = vmatprep.subr.bf16.mxu1 %v1923_v35 }
 0x122   : > { %1497 = vmatmul.mubr.bf16.gmra.mrb[20].mxu1 %v610_v44 }
 0x123   : > { %1529 = vmatpush3.bf16.msra.mxu1 %v1923_v35 }
 0x124   : > { %1530 = vmatprep.subr.bf16.mxu1 %v1930_v36 }
 0x127   : > { %1531 = vmatpush3.bf16.msra.mxu1 %v1930_v36 }
 0x128   : > { %1532 = vmatprep.subr.bf16.mxu1 %v1937_v37 }
 0x12b   : > { %1533 = vmatpush3.bf16.msra.mxu1 %v1937_v37 }
 0x12c   : > { %1534 = vmatprep.subr.bf16.mxu1 %v1944_v38 }
 0x12f   : > { %1535 = vmatpush3.bf16.msra.mxu1 %v1944_v38 }
 0x130   : > { %1536 = vmatprep.subr.bf16.mxu1 %v1674_v19 }
 0x133   : > { %1537 = vmatpush3.bf16.msra.mxu1 %v1674_v19 }
 0x134   : > { %1538 = vmatprep.subr.bf16.mxu1 %v1675_v25 }
 0x137   : > { %1539 = vmatpush3.bf16.msra.mxu1 %v1675_v25  ;;  %v1682_v25 = vld [vmem:[%s2112_s2 + $0xb0] sm:$0xff]  }
 0x138   : > { %1572 = vmatprep.subr.bf16.mxu1 %v1988_v28 }
 0x1cd   : > { %v1470_v30 = vpop.f32.mrb[8].mxu1 }
 0x1ce   : > { %v577_v31 = vadd.f32 %v1470_v30, %v1995_v29  ;;  %v568_v32 = vpop.f32.mrb[9].mxu1 }
 0x1cf   : > { %v569_v33 = vadd.f32 %v1995_v29, %v568_v32  ;;  %v1471_v34 = vpop.f32.mrb[10].mxu1 }
 0x1d0   : > { %v580_v35 = vadd.f32 %v1471_v34, %v1995_v29  ;;  %v571_v36 = vpop.f32.mrb[11].mxu1  ;;  %v601_v38 = vmax.f32 %v577_v31, 0.0 }
 0x1d1   : > { %v572_v37 = vadd.f32 %v1995_v29, %v571_v36  ;;  %v599_v46 = vmax.f32 %v569_v33, 0.0 }
 0x1d2   : > { %v602_v39 = vmax.f32 %v580_v35, 0.0 }
 0x1d3   : > { %v600_v47 = vmax.f32 %v572_v37, 0.0 }
 0x1d4   : > { %v703_v48 = vpack.c.bf16 %v602_v39, %v601_v38 }
 0x1d5   : > { %v702_v49 = vpack.c.bf16 %v600_v47, %v599_v46  ;;  %v1474_v50 = vpop.f32.mrb[12].mxu1 }
 0x1d6   : > { %v593_v51 = vadd.f32 %v1474_v50, %v1995_v29  ;;  %v584_v52 = vpop.f32.mrb[13].mxu1 }
 0x1d7   : > { %v585_v54 = vadd.f32 %v1995_v29, %v584_v52  ;;  %v1475_v55 = vpop.f32.mrb[14].mxu1  ;;  %1516 = vmatprep.mubr.bf16.mxu0 %v702_v49 }
 0x1d8   : > { %v605_v56 = vmax.f32 %v593_v51, 0.0  ;;  %v596_v57 = vadd.f32 %v1475_v55, %v1995_v29  ;;  %v587_v58 = vpop.f32.mrb[15].mxu1  ;;  %1517 = vmatmul.mubr.bf16.vlgmr.msra.gmra.mrb[8].mxu0 %v703_v48 }
 0x1d9   : > { %v603_v59 = vmax.f32 %v585_v54, 0.0  ;;  %v588_v60 = vadd.f32 %v1995_v29, %v587_v58  ;;  %1549 = vmatpush3.bf16.msra.mxu0 %v1988_v28 }
 0x1da   : > { %v606_v61 = vmax.f32 %v596_v57, 0.0  ;;  %1550 = vmatprep.subr.bf16.mxu0 %v2005_v53 }
 0x1db   : > { %v604_v63 = vmax.f32 %v588_v60, 0.0 }
 0x1dc   : > { %v705_v0 = vpack.c.bf16 %v606_v61, %v605_v56 }
 0x1dd   : > { %v704_v2 = vpack.c.bf16 %v604_v63, %v603_v59  ;;  %1551 = vmatpush3.bf16.msra.mxu0 %v2005_v53 }
 0x1de   : > { %1552 = vmatprep.subr.bf16.mxu0 %v1678_v62 }
 0x1df   : > { %1520 = vmatprep.mubr.bf16.mxu0 %v704_v2 }
 0x1e0   : > { %1521 = vmatmul.mubr.bf16.gmra.mrb[12].mxu0 %v705_v0 }
 0x1e1   : > { %1553 = vmatpush3.bf16.msra.mxu0 %v1678_v62 }
 0x1e2   : > { %1554 = vmatprep.subr.bf16.mxu0 %v1679_v3 }
 0x1e5   : > { %1555 = vmatpush3.bf16.msra.mxu0 %v1679_v3 }
 0x1e6   : > { %1556 = vmatprep.subr.bf16.mxu0 %v1680_v4 }
 0x1e9   : > { %1557 = vmatpush3.bf16.msra.mxu0 %v1680_v4 }
 0x1ea   : > { %1558 = vmatprep.subr.bf16.mxu0 %v1681_v5 }
 0x1ed   : > { %v1494_v6 = vpop.f32.mrb[16].mxu1  ;;  %1559 = vmatpush3.bf16.msra.mxu0 %v1681_v5 }
 0x1ee   : > { %v654_v7 = vadd.f32 %v1494_v6, %v1995_v29  ;;  %v645_v8 = vpop.f32.mrb[17].mxu1  ;;  %1560 = vmatprep.subr.bf16.mxu0 %v1682_v25 }
 0x1ef   : > { %v646_v9 = vadd.f32 %v1995_v29, %v645_v8  ;;  %v1495_v10 = vpop.f32.mrb[18].mxu1 }
 0x1f0   : > { %v657_v11 = vadd.f32 %v1495_v10, %v1995_v29  ;;  %v648_v12 = vpop.f32.mrb[19].mxu1  ;;  %v678_v14 = vmax.f32 %v654_v7, 0.0 }
 0x1f1   : > { %v649_v13 = vadd.f32 %v1995_v29, %v648_v12  ;;  %v676_v16 = vmax.f32 %v646_v9, 0.0  ;;  %1561 = vmatpush3.bf16.msra.mxu0 %v1682_v25 }
 0x1f2   : > { %v679_v15 = vmax.f32 %v657_v11, 0.0 }
 0x1f3   : > { %v677_v17 = vmax.f32 %v649_v13, 0.0 }
 0x1f4   : > { %v832_v18 = vpack.c.bf16 %v679_v15, %v678_v14 }
 0x1f5   : > { %v831_v20 = vpack.c.bf16 %v677_v17, %v676_v16  ;;  %v1498_v21 = vpop.f32.mrb[20].mxu1 }
 0x1f6   : > { %v670_v22 = vadd.f32 %v1498_v21, %v1995_v29  ;;  %v661_v23 = vpop.f32.mrb[21].mxu1 }
 0x1f7   : > { %v662_v24 = vadd.f32 %v1995_v29, %v661_v23  ;;  %v1499_v26 = vpop.f32.mrb[22].mxu1  ;;  %1540 = vmatprep.mubr.bf16.mxu1 %v831_v20 }
 0x1f8   : > { %v682_v27 = vmax.f32 %v670_v22, 0.0  ;;  %v673_v40 = vadd.f32 %v1499_v26, %v1995_v29  ;;  %v664_v41 = vpop.f32.mrb[23].mxu1  ;;  %1541 = vmatmul.mubr.bf16.vlgmr.msra.gmra.mrb[24].mxu1 %v832_v18 }
 0x1f9   : > { %v680_v42 = vmax.f32 %v662_v24, 0.0  ;;  %v665_v43 = vadd.f32 %v1995_v29, %v664_v41  ;;  %1573 = vmatpush3.bf16.msra.mxu1 %v1988_v28  ;;  %v1683_v28 = vld [vmem:[%s2112_s2 + $0xb8] sm:$0xff]   ;;  %v1303_v29 = vld [vmem:[%s2113_s3 + $0x2] ss:$0 sm:$0xff] }
 0x1fa   : > { %v683_v1 = vmax.f32 %v673_v40, 0.0  ;;  %1574 = vmatprep.subr.bf16.mxu1 %v2005_v53  ;;  %1562 = vmatprep.subr.bf16.mxu0 %v1683_v28 }
 0x1fb   : > { %v681_v44 = vmax.f32 %v665_v43, 0.0  ;;  %1563 = vmatpush3.bf16.msra.mxu0 %v1683_v28  ;;  %v1748_v43 = vmov 0.0  }
 0x1fc   : > { %v834_v45 = vpack.c.bf16 %v683_v1, %v682_v27  ;;  %1596 = vmatprep.subr.bf16.mxu0 %v1748_v43  ;;  %v1141_v1 = vld [vmem:[%s2115_s5] sm:$0xff] }
 0x1fd   : > { %v833_v19 = vpack.c.bf16 %v681_v44, %v680_v42  ;;  %1575 = vmatpush3.bf16.msra.mxu1 %v2005_v53  ;;  %v1750_v44 = vmov 0  }
 0x1fe   : > { %1576 = vmatprep.subr.bf16.mxu1 %v1678_v62  ;;  %1658 = vset.pattern.permute.xlu0 %v1750_v44 }
 0x1ff   : > { %1544 = vmatprep.mubr.bf16.mxu1 %v833_v19  ;;  %1144 = vperm.xlu0 %1658, %v1141_v1  }
 0x200   : > { %1545 = vmatmul.mubr.bf16.gmra.mrb[28].mxu1 %v834_v45  ;;  %v1328_v45 = vld [vmem:[%s2113_s3 + $0x3] ss:$0 sm:$0xff] }
 0x201   : > { %1577 = vmatpush3.bf16.msra.mxu1 %v1678_v62 }
 0x202   : > { %1578 = vmatprep.subr.bf16.mxu1 %v1679_v3 }
 0x205   : > { %1579 = vmatpush3.bf16.msra.mxu1 %v1679_v3 }
 0x206   : > { %1580 = vmatprep.subr.bf16.mxu1 %v1680_v4 }
 0x209   : > { %1581 = vmatpush3.bf16.msra.mxu1 %v1680_v4 }
 0x20a   : > { %1582 = vmatprep.subr.bf16.mxu1 %v1681_v5 }
 0x20d   : > { %1583 = vmatpush3.bf16.msra.mxu1 %v1681_v5 }
 0x20e   : > { %1584 = vmatprep.subr.bf16.mxu1 %v1682_v25 }
 0x211   : > { %1585 = vmatpush3.bf16.msra.mxu1 %v1682_v25 }
 0x212   : > { %1586 = vmatprep.subr.bf16.mxu1 %v1683_v28 }
 0x215   : > { %1587 = vmatpush3.bf16.msra.mxu1 %v1683_v28 }
 0x2ab   : > { %v1518_v30 = vpop.f32.mrb[8].mxu0 }
 0x2ac   : > { %v801_v31 = vadd.f32 %v1518_v30, %v1303_v29  ;;  %v792_v32 = vpop.f32.mrb[9].mxu0 }
 0x2ad   : > { %v793_v33 = vadd.f32 %v1303_v29, %v792_v32  ;;  %v1519_v34 = vpop.f32.mrb[10].mxu0 }
 0x2ae   : > { %v804_v35 = vadd.f32 %v1519_v34, %v1303_v29  ;;  %v795_v36 = vpop.f32.mrb[11].mxu0  ;;  %v825_v38 = vmax.f32 %v801_v31, 0.0 }
 0x2af   : > { %v796_v37 = vadd.f32 %v1303_v29, %v795_v36  ;;  %v823_v46 = vmax.f32 %v793_v33, 0.0 }
 0x2b0   : > { %v826_v39 = vmax.f32 %v804_v35, 0.0 }
 0x2b1   : > { %v824_v47 = vmax.f32 %v796_v37, 0.0 }
 0x2b2   : > { %v927_v48 = vpack.c.bf16 %v826_v39, %v825_v38 }
 0x2b3   : > { %v926_v49 = vpack.c.bf16 %v824_v47, %v823_v46  ;;  %v1522_v50 = vpop.f32.mrb[12].mxu0 }
 0x2b4   : > { %v817_v51 = vadd.f32 %v1522_v50, %v1303_v29  ;;  %v808_v52 = vpop.f32.mrb[13].mxu0 }
 0x2b5   : > { %v809_v53 = vadd.f32 %v1303_v29, %v808_v52  ;;  %v1523_v54 = vpop.f32.mrb[14].mxu0  ;;  %1564 = vmatprep.mubr.bf16.mxu0 %v926_v49 }
 0x2b6   : > { %v820_v55 = vadd.f32 %v1523_v54, %v1303_v29  ;;  %v811_v56 = vpop.f32.mrb[15].mxu0  ;;  %1565 = vmatmul.mubr.bf16.vlgmr.msra.gmra.mrb[16].mxu0 %v927_v48  ;;  %v829_v58 = vmax.f32 %v817_v51, 0.0 }
 0x2b7   : > { %v812_v57 = vadd.f32 %v1303_v29, %v811_v56  ;;  %v827_v60 = vmax.f32 %v809_v53, 0.0 }
 0x2b8   : > { %v830_v59 = vmax.f32 %v820_v55, 0.0 }
 0x2b9   : > { %v828_v61 = vmax.f32 %v812_v57, 0.0 }
 0x2ba   : > { %v929_v62 = vpack.c.bf16 %v830_v59, %v829_v58 }
 0x2bb   : > { %v928_v63 = vpack.c.bf16 %v828_v61, %v827_v60 }
 0x2bd   : > { %1568 = vmatprep.mubr.bf16.mxu0 %v928_v63 }
 0x2be   : > { %1569 = vmatmul.mubr.bf16.gmra.mrb[20].mxu0 %v929_v62 }
 0x2bf   : > { %1612 = vmatprep.mubr.msk.bf16.mxu0 %vm1749_vm1, %v1748_v43 }
 0x2cb   : > { %v1542_v0 = vpop.f32.mrb[24].mxu1 }
 0x2cc   : > { %v878_v2 = vadd.f32 %v1542_v0, %v1303_v29  ;;  %v869_v3 = vpop.f32.mrb[25].mxu1 }
 0x2cd   : > { %v870_v4 = vadd.f32 %v1303_v29, %v869_v3  ;;  %v1543_v5 = vpop.f32.mrb[26].mxu1 }
 0x2ce   : > { %v881_v6 = vadd.f32 %v1543_v5, %v1303_v29  ;;  %v872_v7 = vpop.f32.mrb[27].mxu1  ;;  %v902_v9 = vmax.f32 %v878_v2, 0.0 }
 0x2cf   : > { %v873_v8 = vadd.f32 %v1303_v29, %v872_v7  ;;  %v900_v11 = vmax.f32 %v870_v4, 0.0 }
 0x2d0   : > { %v903_v10 = vmax.f32 %v881_v6, 0.0 }
 0x2d1   : > { %v901_v12 = vmax.f32 %v873_v8, 0.0 }
 0x2d2   : > { %v1056_v13 = vpack.c.bf16 %v903_v10, %v902_v9 }
 0x2d3   : > { %v1055_v14 = vpack.c.bf16 %v901_v12, %v900_v11  ;;  %v1546_v15 = vpop.f32.mrb[28].mxu1 }
 0x2d4   : > { %v894_v16 = vadd.f32 %v1546_v15, %v1303_v29  ;;  %v885_v17 = vpop.f32.mrb[29].mxu1 }
 0x2d5   : > { %v886_v18 = vadd.f32 %v1303_v29, %v885_v17  ;;  %v1547_v20 = vpop.f32.mrb[30].mxu1  ;;  %1588 = vmatprep.mubr.bf16.mxu1 %v1055_v14 }
 0x2d6   : > { %v906_v21 = vmax.f32 %v894_v16, 0.0  ;;  %v897_v22 = vadd.f32 %v1547_v20, %v1303_v29  ;;  %v888_v23 = vpop.f32.mrb[31].mxu1  ;;  %1589 = vmatmul.mubr.bf16.vlgmr.msra.gmra.mrb[32].mxu1 %v1056_v13 }
 0x2d7   : > { %v889_v24 = vadd.f32 %v1303_v29, %v888_v23  ;;  %v904_v27 = vmax.f32 %v886_v18, 0.0 }
 0x2d8   : > { %v907_v26 = vmax.f32 %v897_v22, 0.0 }
 0x2d9   : > { %v905_v40 = vmax.f32 %v889_v24, 0.0 }
 0x2da   : > { %v1058_v41 = vpack.c.bf16 %v907_v26, %v906_v21 }
 0x2db   : > { %v1057_v42 = vpack.c.bf16 %v905_v40, %v904_v27  ;;  %v1140_v27 = vld [vmem:[%s2114_s4] sm:$0xf]  ;;  %v1145_v40 = vpop.permute.xlu0 %1144 }
 0x2dd   : > { %1592 = vmatprep.mubr.bf16.mxu1 %v1057_v42 }
 0x2de   : > { %1593 = vmatmul.mubr.bf16.gmra.mrb[36].mxu1 %v1058_v41 }
 0x389   : > { %v1566_v19 = vpop.f32.mrb[16].mxu0 }
 0x38a   : > { %v1025_v25 = vadd.f32 %v1566_v19, %v1328_v45  ;;  %v1016_v28 = vpop.f32.mrb[17].mxu0 }
 0x38b   : > { %v1017_v29 = vadd.f32 %v1328_v45, %v1016_v28  ;;  %v1567_v30 = vpop.f32.mrb[18].mxu0 }
 0x38c   : > { %v1028_v31 = vadd.f32 %v1567_v30, %v1328_v45  ;;  %v1019_v32 = vpop.f32.mrb[19].mxu0  ;;  %v1049_v34 = vmax.f32 %v1025_v25, 0.0 }
 0x38d   : > { %v1020_v33 = vadd.f32 %v1328_v45, %v1019_v32  ;;  %v1047_v36 = vmax.f32 %v1017_v29, 0.0 }
 0x38e   : > { %v1050_v35 = vmax.f32 %v1028_v31, 0.0 }
 0x38f   : > { %v1048_v37 = vmax.f32 %v1020_v33, 0.0 }
 0x390   : > { %v1133_v38 = vpack.c.bf16 %v1050_v35, %v1049_v34 }
 0x391   : > { %v1132_v39 = vpack.c.bf16 %v1048_v37, %v1047_v36  ;;  %v1570_v46 = vpop.f32.mrb[20].mxu0 }
 0x392   : > { %v1041_v47 = vadd.f32 %v1570_v46, %v1328_v45  ;;  %v1032_v48 = vpop.f32.mrb[21].mxu0 }
 0x393   : > { %v1033_v49 = vadd.f32 %v1328_v45, %v1032_v48  ;;  %v1571_v50 = vpop.f32.mrb[22].mxu0  ;;  %1597 = vmatpush3.bf16.xpose.msra.mxu0 %v1132_v39 }
 0x394   : > { %v1044_v51 = vadd.f32 %v1571_v50, %v1328_v45  ;;  %v1035_v52 = vpop.f32.mrb[23].mxu0  ;;  %1598 = vmatprep.subr.bf16.mxu0 %v1748_v43  ;;  %v1053_v54 = vmax.f32 %v1041_v47, 0.0 }
 0x395   : > { %v1036_v53 = vadd.f32 %v1328_v45, %v1035_v52  ;;  %v1051_v56 = vmax.f32 %v1033_v49, 0.0 }
 0x396   : > { %v1054_v55 = vmax.f32 %v1044_v51, 0.0 }
 0x397   : > { %v1052_v57 = vmax.f32 %v1036_v53, 0.0 }
 0x398   : > { %v1135_v58 = vpack.c.bf16 %v1054_v55, %v1053_v54 }
 0x399   : > { %v1134_v59 = vpack.c.bf16 %v1052_v57, %v1051_v56 }
 0x39b   : > { %1599 = vmatpush3.bf16.xpose.msra.mxu0 %v1133_v38 }
 0x39c   : > { %1600 = vmatprep.subr.bf16.mxu0 %v1748_v43 }
 0x3a3   : > { %1601 = vmatpush3.bf16.xpose.msra.mxu0 %v1134_v59 }
 0x3a4   : > { %1602 = vmatprep.subr.bf16.mxu0 %v1748_v43 }
 0x3a9   : > { %v1590_v60 = vpop.f32.mrb[32].mxu1 }
 0x3aa   : > { %v1102_v61 = vadd.f32 %v1590_v60, %v1328_v45  ;;  %v1093_v62 = vpop.f32.mrb[33].mxu1 }
 0x3ab   : > { %v1094_v63 = vadd.f32 %v1328_v45, %v1093_v62  ;;  %v1591_v0 = vpop.f32.mrb[34].mxu1  ;;  %1603 = vmatpush3.bf16.xpose.msra.mxu0 %v1135_v58 }
 0x3ac   : > { %v1105_v2 = vadd.f32 %v1591_v0, %v1328_v45  ;;  %v1096_v3 = vpop.f32.mrb[35].mxu1  ;;  %1604 = vmatprep.subr.bf16.mxu0 %v1748_v43  ;;  %v1126_v5 = vmax.f32 %v1102_v61, 0.0 }
 0x3ad   : > { %v1097_v4 = vadd.f32 %v1328_v45, %v1096_v3  ;;  %v1124_v7 = vmax.f32 %v1094_v63, 0.0 }
 0x3ae   : > { %v1127_v6 = vmax.f32 %v1105_v2, 0.0 }
 0x3af   : > { %v1125_v8 = vmax.f32 %v1097_v4, 0.0 }
 0x3b0   : > { %v1137_v9 = vpack.c.bf16 %v1127_v6, %v1126_v5 }
 0x3b1   : > { %v1136_v10 = vpack.c.bf16 %v1125_v8, %v1124_v7  ;;  %v1594_v11 = vpop.f32.mrb[36].mxu1 }
 0x3b2   : > { %v1118_v12 = vadd.f32 %v1594_v11, %v1328_v45  ;;  %v1109_v13 = vpop.f32.mrb[37].mxu1 }
 0x3b3   : > { %v1110_v14 = vadd.f32 %v1328_v45, %v1109_v13  ;;  %v1595_v15 = vpop.f32.mrb[38].mxu1  ;;  %1605 = vmatpush3.bf16.xpose.msra.mxu0 %v1136_v10 }
 0x3b4   : > { %v1121_v16 = vadd.f32 %v1595_v15, %v1328_v45  ;;  %v1112_v17 = vpop.f32.mrb[39].mxu1  ;;  %1606 = vmatprep.subr.bf16.mxu0 %v1748_v43  ;;  %v1130_v20 = vmax.f32 %v1118_v12, 0.0 }
 0x3b5   : > { %v1113_v18 = vadd.f32 %v1328_v45, %v1112_v17  ;;  %v1128_v22 = vmax.f32 %v1110_v14, 0.0 }
 0x3b6   : > { %v1131_v21 = vmax.f32 %v1121_v16, 0.0 }
 0x3b7   : > { %v1129_v23 = vmax.f32 %v1113_v18, 0.0 }
 0x3b8   : > { %v1139_v24 = vpack.c.bf16 %v1131_v21, %v1130_v20 }
 0x3b9   : > { %v1138_v26 = vpack.c.bf16 %v1129_v23, %v1128_v22 }
 0x3bb   : > { %1607 = vmatpush3.bf16.xpose.msra.mxu0 %v1137_v9 }
 0x3bc   : > { %1608 = vmatprep.subr.bf16.mxu0 %v1748_v43 }
 0x3c3   : > { %1609 = vmatpush3.bf16.xpose.msra.mxu0 %v1138_v26 }
 0x3c4   : > { %1610 = vmatprep.subr.bf16.mxu0 %v1748_v43 }
 0x3cb   : > { %1611 = vmatpush3.bf16.xpose.msra.mxu0 %v1139_v24 }
 0x3d2   : > { %1613 = vmatmul.mubr.bf16.vlgmr.msra.gmra.mrb[24].mxu0 %v1140_v27 }
 0x4a5   : > { %v1181_v41 = vpop.f32.mrb[24].mxu0 }
 0x4a6   : > { %v1182_v42 = vadd.f32 %v1181_v41, %v1145_v40  ;;  %v1614_v1 = vpop.f32.mrb[25].mxu0 }
 0x4a7   : > { %v1184_v43 = vpop.f32.mrb[26].mxu0 }
 0x4a8   : > { %1187 = vst [vmem:[%s245_s19] sm:$0xff] %v1182_v42  ;;  %v1615_v44 = vpop.f32.mrb[27].mxu0 }
 0x4a9   : > { %1697 = shalt.err (!%p1694_p3)
}
 0x4aa   : > { %s1698_s13 = scalar_lea.hbm %s2068_s29, 128  ;;  %s1702_s16 = scalar_lea.hbm %s2116_s6, 256 }
 0x4ab   : > { %p1699_p4 = scmp.ne.s32.totalorder %s2068_s29, %s1698_s13  ;;  %p1703_p9 = scmp.lt.u32.totalorder %s2068_s29, %s2116_s6 }
 0x4ac   : > { %p1704_p10 = scmp.lt.u32.totalorder %s1702_s16, %s1698_s13  ;;  %p1706_p12 = scmp.lt.u32.totalorder %s1698_s13, %s2068_s29 }
 0x4ad   : > { %p1700_p7 = pnand %p1699_p4, %p1825_p5 }
 0x4ae   : > { %p1705_p11 = por %p1704_p10, %p1703_p9 }
 0x4af   : > { %p1701_p8 = pneg %p1700_p7 }
 0x4b0   : > { %p1707_p13 = por %p1706_p12, %p1705_p11 }
 0x4b2   : > { %p1708_p0 = pnand %p1707_p13, %p1701_p8 }
 0x4b4   : > { %1711 = shalt.err (!%p1708_p0)
}
 0x4b5   : > { %1616 = dma.vmem_to_hbm [thread:$0]  (%p1825_p5), %s2070_s20, 128, %s2068_s29, %s1189_s9  }
 0x4b6 PF: > { %p1622_p1 = scmp.ge.s32.totalorder %s1746_s24, 2  ;;  %s1214_s19 = sand.u32 1, %s1734_s21  }
 0x4b7   : > { %s1215_s26 = scalar_lea.sflag [#allocation3], %s1214_s19 }
 0x4b8   : > { %p1619_p2 = pnand %p1622_p1, %p1829_p6 }
 0x4ba   : > { %1729 = dma.done.wait (!%p1619_p2), %s1215_s26, 128  }
 0x4bb   : > { %1731 = vsyncadd (!%p1619_p2), %s1215_s26, 4294967168  ;;  %p16_p3 = scmp.ge.s32.totalorder %s1812_s27, 4   ;;  %s2119_s21 = smov %s1738_s22 }
 0x4bc   : > { %s2120_s22 = smov %s1742_s23  ;;  %s2121_s23 = smov %s1823_s30 }
 0x4bd   : > { %s2122_s24 = smov %s1812_s27  ;;  %18 = sbr.rel (!%p16_p3) target bundleno = 3 (0x3), region = 81 }
 0x4c4   :  { %1220 = vsyncpa [#allocation3], 1 }
 0x4c5   :  { %1222 = vsyncpa [#allocation3 + $0x1], 1 }

</bundles_post_ra>
